<compile_context>
chip_gen: v5e
topology: v5e:2x2
jax: 0.10.0
libtpu: 0.0.40
codegen_flags: <defaults>
</compile_context>

<pallas_src>
import jax
import jax.numpy as jnp
from jax.experimental import pallas as pl
from jax.experimental.pallas import tpu as pltpu


def _residual_kernel(x_ref, hx_ref, o_ref):
    # Elementwise residual add on the current VMEM tile (VPU hot path).
    o_ref[...] = x_ref[...] + hx_ref[...]


def _round_up(n, m):
    return ((n + m - 1) // m) * m


# Widest-first: wider lanes -> fewer, fatter, fully unmasked vst stores.
_LANE_CANDIDATES = (1024, 512, 256, 128)


def residual(x, hx):
    """Return x + Hx using a tiled, lane-dense Pallas kernel."""
    assert x.shape == hx.shape and x.dtype == hx.dtype
    orig_shape = x.shape
    dtype = x.dtype

    total = 1
    for d in orig_shape:
        total *= d
    if total == 0:
        return x + hx  # degenerate empty tensor

    itemsize = jnp.dtype(dtype).itemsize
    # Sublane packing factor: 8 rows/vreg for 32-bit, 16 for bf16, 32 for int8.
    sublane = max(8, 32 // max(itemsize, 1))

    # Zero-copy fast path: widest lane count that divides the element count.
    lane_cols = None
    for c in _LANE_CANDIDATES:
        if total % c == 0:
            lane_cols = c
            break
    needs_pad = lane_cols is None
    if needs_pad:
        lane_cols = 128  # smallest lane width -> smallest pad for ragged sizes

    rows = pl.cdiv(total, lane_cols)
    padded_total = rows * lane_cols

    x_flat = x.reshape(-1)
    hx_flat = hx.reshape(-1)
    if needs_pad:
        # TODO(synk): jnp.pad is a full-array copy; only ragged shapes hit this.
        pad = padded_total - total
        x_flat = jnp.pad(x_flat, (0, pad))
        hx_flat = jnp.pad(hx_flat, (0, pad))
    x2 = x_flat.reshape(rows, lane_cols)
    hx2 = hx_flat.reshape(rows, lane_cols)

    # ~4 MiB per operand block; 3 operands x 2 pipeline buffers = 24 MiB VMEM.
    target_block_bytes = 4 * 1024 * 1024
    target_rows = _round_up(
        max(sublane, target_block_bytes // (lane_cols * itemsize)), sublane)

    if rows <= target_rows:
        # Single block; block row-dim equals the full array row count, which
        # satisfies the tiling rule regardless of the packing factor.
        tm = rows
    else:
        # Multi-block: sublane-aligned tile; Pallas masks the partial tail.
        tm = target_rows

    grid = (pl.cdiv(rows, tm),)
    spec = pl.BlockSpec((tm, lane_cols), lambda i: (i, 0))

    out = pl.pallas_call(
        _residual_kernel,
        out_shape=jax.ShapeDtypeStruct((rows, lane_cols), dtype),
        grid=grid,
        in_specs=[spec, spec],
        out_specs=spec,
        compiler_params=pltpu.CompilerParams(
            dimension_semantics=("parallel",),
            vmem_limit_bytes=32 << 20,
        ),
    )(x2, hx2)

    if needs_pad:
        return out.reshape(-1)[:total].reshape(orig_shape)
    return out.reshape(orig_shape)


if __name__ == "__main__":
    key = jax.random.PRNGKey(0)
    k1, k2, k3, k4, k5, k6 = jax.random.split(key, 6)

    ok = True

    # Small shape consistent with the module: (batch, seq, hidden).
    # total = 512 -> divisible by 128 -> zero-copy (no pad / no slice) path.
    B, S, H = 2, 8, 32
    x = jax.random.normal(k1, (B, S, H), dtype=jnp.float32)
    hx = jax.random.normal(k2, (B, S, H), dtype=jnp.float32)
    out = jax.block_until_ready(residual(x, hx))
    ref = x + hx
    ok &= out.shape == ref.shape and out.dtype == ref.dtype
    ok &= bool(jnp.allclose(out, ref, atol=1e-6, rtol=1e-6))

    # Ragged shape (total = 14800, not a multiple of 128): exercises the
    # minimal-pad + cdiv-grid / masked-trailing-block path.
    x2 = jax.random.normal(k3, (4, 37, 100), dtype=jnp.float32)
    hx2 = jax.random.normal(k4, (4, 37, 100), dtype=jnp.float32)
    out2 = jax.block_until_ready(residual(x2, hx2))
    ref2 = x2 + hx2
    ok &= out2.shape == ref2.shape and out2.dtype == ref2.dtype
    ok &= bool(jnp.allclose(out2, ref2, atol=1e-6, rtol=1e-6))

    # bf16 path (sublane packing factor 16), also ragged (total = 960).
    x3 = jax.random.normal(k5, (3, 5, 64), dtype=jnp.bfloat16)
    hx3 = jax.random.normal(k6, (3, 5, 64), dtype=jnp.bfloat16)
    out3 = jax.block_until_ready(residual(x3, hx3))
    ref3 = x3 + hx3
    ok &= out3.shape == ref3.shape and out3.dtype == ref3.dtype
    ok &= bool(jnp.allclose(out3.astype(jnp.float32), ref3.astype(jnp.float32),
                            atol=1e-2, rtol=1e-2))

    # Larger aligned shape (total = 2*128*1024 -> 1024-wide lanes, multi-block).
    xk1, xk2 = jax.random.split(k1)
    x4 = jax.random.normal(xk1, (2, 128, 1024), dtype=jnp.float32)
    hx4 = jax.random.normal(xk2, (2, 128, 1024), dtype=jnp.float32)
    out4 = jax.block_until_ready(residual(x4, hx4))
    ref4 = x4 + hx4
    ok &= out4.shape == ref4.shape and out4.dtype == ref4.dtype
    ok &= bool(jnp.allclose(out4, ref4, atol=1e-6, rtol=1e-6))

    assert ok
    print("KERNEL_OK")
</pallas_src>

<mosaic_0001>
module attributes {stable_mosaic.version = 11 : i64} {
  func.func @_residual_kernel(%arg0: i32, %arg1: memref<1x512xf32, #tpu.memory_space<vmem>>, %arg2: memref<1x512xf32, #tpu.memory_space<vmem>>, %arg3: memref<1x512xf32, #tpu.memory_space<vmem>>) attributes {dimension_semantics = [#tpu.dimension_semantics<parallel>], iteration_bounds = array<i64: 1>, scalar_prefetch = 0 : i64, scratch_operands = 0 : i64, tpu.core_type = #tpu.core_type<tc>, window_params = [{transform_indices = @transform_0, window_bounds = array<i64: 1, 512>}, {transform_indices = @transform_1, window_bounds = array<i64: 1, 512>}, {transform_indices = @transform_2, window_bounds = array<i64: 1, 512>}]} {
    %c0 = arith.constant 0 : index
    %c0_0 = arith.constant 0 : index
    %0 = vector.load %arg1[%c0, %c0_0] : memref<1x512xf32, #tpu.memory_space<vmem>>, vector<1x512xf32>
    %c0_1 = arith.constant 0 : index
    %c0_2 = arith.constant 0 : index
    %1 = vector.load %arg2[%c0_1, %c0_2] : memref<1x512xf32, #tpu.memory_space<vmem>>, vector<1x512xf32>
    %2 = arith.addf %0, %1 : vector<1x512xf32>
    %c0_3 = arith.constant 0 : index
    %c0_4 = arith.constant 0 : index
    %3 = vector.load %arg3[%c0_3, %c0_4] : memref<1x512xf32, #tpu.memory_space<vmem>>, vector<1x512xf32>
    tpu.vector_store %arg3[%c0_3, %c0_4], %2 {strides = array<i32>} : memref<1x512xf32, #tpu.memory_space<vmem>>, vector<1x512xf32>,
    return
  }
  func.func @transform_0(%arg0: i32) -> (i32, i32) {
    %c0_i32 = arith.constant 0 : i32
    %c0_i32_0 = arith.constant 0 : i32
    return %arg0, %c0_i32 : i32, i32
  }
  func.func @transform_1(%arg0: i32) -> (i32, i32) {
    %c0_i32 = arith.constant 0 : i32
    %c0_i32_0 = arith.constant 0 : i32
    return %arg0, %c0_i32 : i32, i32
  }
  func.func @transform_2(%arg0: i32) -> (i32, i32) {
    %c0_i32 = arith.constant 0 : i32
    %c0_i32_0 = arith.constant 0 : i32
    return %arg0, %c0_i32 : i32, i32
  }
}

</mosaic_0001>

<bundles_post_ra>
// kernel: tpu_custom_call.1
= control target key start
LH: loop header
LB: loop body
LE: loop exit
PB: predicated region body
PF: predicated region fallthrough
CT: control target
= control target key end

     0   :  { %7 = vsyncpa [#allocation3], 0  ;;  %s174_s0 = inlined_call_operand.hbm [shape: f32[1,512], index: 0, kind: input, shape index: {}]   ;;  %s175_s1 = inlined_call_operand.hbm [shape: f32[1,512], index: 1, kind: input, shape index: {}]   ;;  %s176_s2 = inlined_call_operand.hbm [shape: f32[1,512], index: 2, kind: output, shape index: {}]  }
   0x1   :  { %8 = vsyncpa [#allocation6], 0 }
   0x2   :  { %9 = vsyncpa [#allocation4], 0  ;;  %s15_s11 = sshll.u32 %s174_s0, 4  ;;  %s147_s12 = smov [#allocation2]   ;;  %s16_s11 = int_to_ptr.hbm [resolvable:$true] %s15_s11 }
   0x3   :  { %s17_s13 = sshll.u32 %s147_s12, 4  ;;  %s26_s16 = sshll.u32 %s175_s1, 4  ;;  %s18_s13 = int_to_ptr.vmem [resolvable:$true] %s17_s13  ;;  %s27_s16 = int_to_ptr.hbm [resolvable:$true] %s26_s16 }
   0x4   :  { %20 = dma.hbm_to_vmem [thread:$0]  %s16_s11, 64, %s18_s13, [#allocation3]  }
   0x5   :  { %s148_s17 = smov [#allocation5]  }
   0x6   :  { %s28_s18 = sshll.u32 %s148_s17, 4  ;;  %s29_s18 = int_to_ptr.vmem [resolvable:$true] %s28_s18 }
   0x7   :  { %31 = dma.hbm_to_vmem [thread:$0]  %s27_s16, 64, %s29_s18, [#allocation6]  }
   0x8   :  { %141 = dma.done.wait [#allocation3], 64  }
   0x9   :  { %142 = vsyncadd [#allocation3], 4294967232 }
   0xa   :  { %143 = dma.done.wait [#allocation6], 64  }
   0xb   :  { %144 = vsyncadd [#allocation6], 4294967232  ;;  %v43_v0 = vlaneseq  ;;  %s149_s0 = smov [#allocation7]   ;;  %s55_s22 = sshll.u32 %s176_s2, 4  ;;  %v40_v1 = vld [vmem:[#allocation2] sm:$0xf]  ;;  %s56_s22 = int_to_ptr.hbm [resolvable:$true] %s55_s22 }
   0xc   :  { %s53_s19 = sshll.u32 %s149_s0, 4  ;;  %v41_v2 = vld [vmem:[#allocation5] sm:$0xf]  ;;  %s54_s19 = int_to_ptr.vmem [resolvable:$true] %s53_s19 }
   0xd   :  { %vm45_vm0 = vcmp.lt.s32.totalorder %v43_v0, 512  ;;  %v42_v3 = vadd.f32 %v41_v2, %v40_v1 }
   0xf   :  { %47 = vst.msk [vmem:[#allocation7] sm:$0xf] %vm45_vm0, %v42_v3 }
  0x10   :  { %58 = dma.vmem_to_hbm [thread:$0]  %s54_s19, 64, %s56_s22, [#allocation4]  }
  0x11   :  { %145 = dma.done.wait [#allocation4], 64  }
  0x12   :  { %146 = vsyncadd [#allocation4], 4294967232 }
  0x13   :  { %63 = vsyncpa [#allocation3], 1 }
  0x14   :  { %64 = vsyncpa [#allocation6], 1 }
  0x15   :  { %65 = vsyncpa [#allocation4], 1 }

</bundles_post_ra>
